<compile_context>
chip_gen: v6e
topology: v6e:2x2x1
jax: 0.10.0
libtpu: 0.0.40
codegen_flags: <defaults>
</compile_context>

<pallas_src>
import math
import functools

import jax
import jax.numpy as jnp
from jax import lax
from jax.experimental import pallas as pl
from jax.experimental.pallas import tpu as pltpu

_MIB = 1024 * 1024


def _vmem_limit_bytes():
    """Generation-aware scoped-VMEM budget (v7x only has 64 MiB physical VMEM)."""
    try:
        info = pltpu.get_tpu_info()
        cap = getattr(info, "vmem_capacity_bytes", None)
        if cap is None:
            return None
        # leave ~25% headroom for compiler-internal scratch; cap at 100 MiB.
        return int(min(cap * 3 // 4, 100 * _MIB))
    except Exception:
        return None


_VMEM_LIMIT = _vmem_limit_bytes()


def _compiler_params(dim_semantics):
    return pltpu.CompilerParams(dimension_semantics=dim_semantics,
                                vmem_limit_bytes=_VMEM_LIMIT)


def _token_tile(T, per_token_bytes):
    """Largest token tile (multiple of 8, divides T) whose VMEM footprint fits."""
    budget = (_VMEM_LIMIT or 32 * _MIB) // 4      # headroom for double-buffered weights
    for t in (512, 256, 128, 64, 32, 16, 8):
        if t <= T and T % t == 0 and t * per_token_bytes <= budget:
            return t
    return T


# --------------------------- QKV projection kernel ---------------------------


def _qkv_kernel(x_ref, wq_ref, wk_ref, wv_ref, bq_ref, bk_ref, bv_ref,
                q_ref, k_ref, v_ref):
    # bf16 MXU operands, f32 accumulation; three lane-dense outputs.
    x = x_ref[...].astype(jnp.bfloat16)
    q_ref[...] = (jnp.dot(x, wq_ref[...], preferred_element_type=jnp.float32)
                  + bq_ref[...])
    k_ref[...] = (jnp.dot(x, wk_ref[...], preferred_element_type=jnp.float32)
                  + bk_ref[...])
    v_ref[...] = (jnp.dot(x, wv_ref[...], preferred_element_type=jnp.float32)
                  + bv_ref[...])


def pallas_qkv(x2d, wq_t, wk_t, wv_t, bq, bk, bv):
    T, D = x2d.shape
    dh = wk_t.shape[1]
    tm = _token_tile(T, 4 * (2 * D + 2 * dh) + 2 * D)
    # TODO(synk): add an N-tile (and K-tile + accumulator) grid axis for D >~ 2048
    # so the (D,D) weight is not fully resident; bf16 halves it already.
    return pl.pallas_call(
        _qkv_kernel,
        out_shape=(jax.ShapeDtypeStruct((T, D), jnp.float32),
                   jax.ShapeDtypeStruct((T, dh), jnp.float32),
                   jax.ShapeDtypeStruct((T, dh), jnp.float32)),
        grid=(T // tm,),
        in_specs=[pl.BlockSpec((tm, D), lambda i: (i, 0)),
                  pl.BlockSpec((D, D), lambda i: (0, 0)),
                  pl.BlockSpec((D, dh), lambda i: (0, 0)),
                  pl.BlockSpec((D, dh), lambda i: (0, 0)),
                  pl.BlockSpec((1, D), lambda i: (0, 0)),
                  pl.BlockSpec((1, dh), lambda i: (0, 0)),
                  pl.BlockSpec((1, dh), lambda i: (0, 0))],
        out_specs=(pl.BlockSpec((tm, D), lambda i: (i, 0)),
                   pl.BlockSpec((tm, dh), lambda i: (i, 0)),
                   pl.BlockSpec((tm, dh), lambda i: (i, 0))),
        compiler_params=_compiler_params(("parallel",)),
    )(x2d, wq_t, wk_t, wv_t, bq.reshape(1, D), bk.reshape(1, dh), bv.reshape(1, dh))


# ------------- fused attention + out-proj + residual + LayerNorm -------------


def _attn_block_kernel(q_ref, k_ref, v_ref, x_ref, wout_ref, bout_ref,
                       lnw_ref, lnb_ref, o_ref, ctx_ref, *, heads, dh, scale, eps):
    # q_ref: (1, S, D) lane-dense; k_ref/v_ref: (1, S, dh) shared across heads (MQA)
    # x_ref: (1, S, D) residual; wout_ref: (D, D) bf16; ctx_ref: (S, D) f32 scratch.
    k = k_ref[0].astype(jnp.bfloat16)     # (S, dh)
    v = v_ref[0].astype(jnp.bfloat16)     # (S, dh)
    S = k.shape[0]

    row = lax.broadcasted_iota(jnp.int32, (S, S), 0)
    col = lax.broadcasted_iota(jnp.int32, (S, S), 1)
    causal = col > row
    neg = jnp.finfo(jnp.float32).min

    # Per-head scores/softmax; each ctx_h lands in a static lane slice of the
    # (S, D) scratch so the out-projection below is a single K=D MXU matmul
    # (no per-head K=dh matmuls, no VPU accumulation chain).
    for h in range(heads):
        qh = q_ref[0, :, h * dh:(h + 1) * dh].astype(jnp.bfloat16)  # static lane slice
        s = lax.dot_general(qh, k, (((1,), (1,)), ((), ())),
                            preferred_element_type=jnp.float32) * scale
        s = jnp.where(causal, neg, s)
        m = jnp.max(s, axis=-1, keepdims=True)
        e = jnp.exp(s - m)
        p = e / jnp.sum(e, axis=-1, keepdims=True)      # exact divide (parity)
        ctx_ref[:, h * dh:(h + 1) * dh] = jnp.dot(
            p.astype(jnp.bfloat16), v, preferred_element_type=jnp.float32)
    # TODO(synk): at production S, add a query-tile grid axis with flash-style
    # online softmax (kv axis 'arbitrary' and last) and fold heads into M for
    # bigger MXU pushes instead of the full (S,S) score per head.

    ctx = ctx_ref[...].astype(jnp.bfloat16)             # (S, D)
    y = (jnp.dot(ctx, wout_ref[...], preferred_element_type=jnp.float32)
         + bout_ref[...] + x_ref[0])                    # single K=D out-proj + residual
    mean = jnp.mean(y, axis=-1, keepdims=True)
    var = jnp.mean(jnp.square(y - mean), axis=-1, keepdims=True)
    o_ref[0] = (y - mean) * lax.rsqrt(var + eps) * lnw_ref[...] + lnb_ref[...]


def pallas_attention_block(q, k, v, x, wout_t, bout, ln_w, ln_b, *, scale, eps=1e-5):
    # q: (B, S, D), k/v: (B, S, dh), x: (B, S, D) -> LN(out_proj(attn)+x): (B, S, D)
    B, S, D = q.shape
    dh = k.shape[-1]
    heads = D // dh
    return pl.pallas_call(
        functools.partial(_attn_block_kernel, heads=heads, dh=dh, scale=scale, eps=eps),
        out_shape=jax.ShapeDtypeStruct((B, S, D), jnp.float32),
        grid=(B,),
        in_specs=[pl.BlockSpec((1, S, D), lambda b: (b, 0, 0)),
                  pl.BlockSpec((1, S, dh), lambda b: (b, 0, 0)),
                  pl.BlockSpec((1, S, dh), lambda b: (b, 0, 0)),
                  pl.BlockSpec((1, S, D), lambda b: (b, 0, 0)),
                  pl.BlockSpec((D, D), lambda b: (0, 0)),
                  pl.BlockSpec((1, D), lambda b: (0, 0)),
                  pl.BlockSpec((1, D), lambda b: (0, 0)),
                  pl.BlockSpec((1, D), lambda b: (0, 0))],
        out_specs=pl.BlockSpec((1, S, D), lambda b: (b, 0, 0)),
        scratch_shapes=[pltpu.VMEM((S, D), jnp.float32)],
        compiler_params=_compiler_params(("parallel",)),
    )(q, k, v, x, wout_t, bout.reshape(1, D), ln_w.reshape(1, D), ln_b.reshape(1, D))


# -------- fused Switch-MoE: experts + gated combine + residual + LN ----------
# Experts live on the trailing 'arbitrary' grid axis: only one (D,HID)+(HID,D)
# bf16 expert tile is resident (and double-buffered) at a time, pipelined
# against the previous expert's matmuls.  Accumulation happens in VMEM scratch.


def _moe_block_kernel(x_ref, g_ref, w1_ref, b1_ref, w2_ref, b2_ref,
                      lnw_ref, lnb_ref, o_ref, acc_ref, *, eps):
    e = pl.program_id(1)

    @pl.when(e == 0)
    def _():
        acc_ref[...] = jnp.zeros_like(acc_ref)

    x = x_ref[...]                                     # (tm, D) f32 add_normed tokens
    xb = x.astype(jnp.bfloat16)
    h = jnp.dot(xb, w1_ref[0], preferred_element_type=jnp.float32) + b1_ref[0]
    h = 0.5 * h * (1.0 + lax.erf(h * (1.0 / math.sqrt(2.0))))     # exact GELU, f32
    y = (jnp.dot(h.astype(jnp.bfloat16), w2_ref[0],
                 preferred_element_type=jnp.float32) + b2_ref[0])
    acc_ref[...] += g_ref[0] * y                       # gate weight per token, (tm,1) bcast
    # TODO(synk): at real expert counts, use PrefetchScalarGridSpec with per-expert
    # token offsets so each token only runs its top-1 expert (routed MoE) instead
    # of dense all-expert evaluation.

    @pl.when(e == pl.num_programs(1) - 1)
    def _():
        yo = acc_ref[...] + x                          # residual (add_normed)
        mean = jnp.mean(yo, axis=-1, keepdims=True)
        var = jnp.mean(jnp.square(yo - mean), axis=-1, keepdims=True)
        o_ref[...] = (yo - mean) * lax.rsqrt(var + eps) * lnw_ref[...] + lnb_ref[...]


def pallas_moe_block(x2d, gate_et1, w1s, b1s, w2s, b2s, ln_w, ln_b, *, eps=1e-5):
    T, D = x2d.shape
    E, _, HID = w1s.shape
    tm = _token_tile(T, 4 * (3 * D + HID) + 8)
    return pl.pallas_call(
        functools.partial(_moe_block_kernel, eps=eps),
        out_shape=jax.ShapeDtypeStruct((T, D), jnp.float32),
        grid=(T // tm, E),                             # expert (reduction) axis last
        in_specs=[pl.BlockSpec((tm, D), lambda i, e: (i, 0)),
                  pl.BlockSpec((1, tm, 1), lambda i, e: (e, i, 0)),
                  pl.BlockSpec((1, D, HID), lambda i, e: (e, 0, 0)),
                  pl.BlockSpec((1, 1, HID), lambda i, e: (e, 0, 0)),
                  pl.BlockSpec((1, HID, D), lambda i, e: (e, 0, 0)),
                  pl.BlockSpec((1, 1, D), lambda i, e: (e, 0, 0)),
                  pl.BlockSpec((1, D), lambda i, e: (0, 0)),
                  pl.BlockSpec((1, D), lambda i, e: (0, 0))],
        out_specs=pl.BlockSpec((tm, D), lambda i, e: (i, 0)),
        scratch_shapes=[pltpu.VMEM((tm, D), jnp.float32)],
        compiler_params=_compiler_params(("parallel", "arbitrary")),
    )(x2d, gate_et1, w1s, b1s, w2s, b2s, ln_w.reshape(1, D), ln_b.reshape(1, D))


# ------------------------------ forward wrapper ------------------------------


def switch_transformer_block_forward(x, p, *, heads, num_experts,
                                     capacity_factor=1.0, gate_eps=1e-6):
    B, S, D = x.shape
    dh = D // heads
    T = B * S
    x2d = x.reshape(T, D)

    # pre-transpose weights once to (Din, Dout); matmul operands to bf16
    wqkv_t = p["wqkv_w"].T                                        # (D, D + 2*dh)
    wq_t = wqkv_t[:, :D].astype(jnp.bfloat16)
    wk_t = wqkv_t[:, D:D + dh].astype(jnp.bfloat16)
    wv_t = wqkv_t[:, D + dh:].astype(jnp.bfloat16)
    bq = p["wqkv_b"][:D]
    bk = p["wqkv_b"][D:D + dh]
    bv = p["wqkv_b"][D + dh:]
    wout_t = p["out_w"].T.astype(jnp.bfloat16)                    # (D, D)
    gate_w_t = p["gate_w"].T                                      # (D, E)
    w1s = jnp.stack([ep["w1"].T for ep in p["experts"]]).astype(jnp.bfloat16)   # (E, D, HID)
    b1s = jnp.stack([ep["b1"].reshape(1, -1) for ep in p["experts"]])           # (E, 1, HID)
    w2s = jnp.stack([ep["w2"].T for ep in p["experts"]]).astype(jnp.bfloat16)   # (E, HID, D)
    b2s = jnp.stack([ep["b2"].reshape(1, -1) for ep in p["experts"]])           # (E, 1, D)

    # ---- MultiQueryAttention (causal, qk_ln disabled) + residual + LN ----
    q2d, k2d, v2d = pallas_qkv(x2d, wq_t, wk_t, wv_t, bq, bk, bv)
    q = q2d.reshape(B, S, D)                                      # free reshapes only
    k = k2d.reshape(B, S, dh)
    v = v2d.reshape(B, S, dh)
    h1 = pallas_attention_block(q, k, v, x, wout_t, p["out_b"],
                                p["ln_w"], p["ln_b"],
                                scale=1.0 / math.sqrt(dh))        # (B, S, D)
    h1_2d = h1.reshape(T, D)                                      # add_normed

    # ---- SwitchGate (tiny (T, E) logits -> plain JAX glue, no kernel launch) ----
    gate_logits = jnp.dot(h1_2d, gate_w_t) + p["gate_b"]          # (T, E)
    gate_scores = jax.nn.softmax(gate_logits.reshape(B, S, num_experts), axis=-1)
    capacity = int(capacity_factor * B)                           # int(cf * x.size(0))
    top_idx = jnp.argmax(gate_scores, axis=-1)                    # (B, S)
    # torch scatter_(dim=1, top_k_indices, 1): mask[b, top_idx[b, s], 0] = 1
    hit = jnp.any(top_idx[:, :, None] == jnp.arange(S)[None, None, :], axis=1)  # (B, S)
    mask = jnp.zeros((B, S, num_experts), jnp.float32).at[:, :, 0].set(
        hit.astype(jnp.float32))
    masked = gate_scores * mask
    denom = masked.sum(axis=0, keepdims=True) + gate_eps
    gate_final = (masked / denom * capacity).reshape(T, num_experts)
    gate_et1 = gate_final.T.reshape(num_experts, T, 1)            # expert-major for kernel
    # TODO(synk): NaN-guard branches of the reference are omitted (inputs are finite).

    # ---- fused experts + gated combine + residual + LayerNorm ----
    out2d = pallas_moe_block(h1_2d, gate_et1, w1s, b1s, w2s, b2s,
                             p["ln_w"], p["ln_b"])                # (T, D)
    return out2d.reshape(B, S, D)


# ----------------------------------- main ------------------------------------

if __name__ == "__main__":
    B, S, D = 2, 8, 32
    HEADS = 4
    DH = D // HEADS
    MULT = 4
    E = 3
    HID = D * MULT

    key = jax.random.PRNGKey(0)
    keys = jax.random.split(key, 20)

    def init(k, shape, scale=0.02):
        return scale * jax.random.normal(k, shape, jnp.float32)

    params = {
        "wqkv_w": init(keys[0], (D + 2 * DH, D)),
        "wqkv_b": init(keys[1], (D + 2 * DH,)),
        "out_w": init(keys[2], (D, D)),
        "out_b": init(keys[3], (D,)),
        "ln_w": jnp.ones((D,), jnp.float32),
        "ln_b": jnp.zeros((D,), jnp.float32),
        "gate_w": init(keys[4], (E, D)),
        "gate_b": init(keys[5], (E,)),
        "experts": [
            {
                "w1": init(keys[6 + 4 * e], (HID, D)),
                "b1": init(keys[7 + 4 * e], (HID,)),
                "w2": init(keys[8 + 4 * e], (D, HID)),
                "b2": init(keys[9 + 4 * e], (D,)),
            }
            for e in range(E)
        ],
    }

    x = jax.random.normal(keys[18], (B, S, D), jnp.float32)

    out = switch_transformer_block_forward(x, params, heads=HEADS, num_experts=E)
    out = jax.block_until_ready(out)
    assert out.shape == (B, S, D)
    assert bool(jnp.all(jnp.isfinite(out)))
    print("KERNEL_OK")
</pallas_src>

<mosaic_0001>
module attributes {stable_mosaic.version = 11 : i64} {
  func.func @_qkv_kernel(%arg0: i32, %arg1: memref<16x32xf32, #tpu.memory_space<vmem>>, %arg2: memref<32x32xbf16, #tpu.memory_space<vmem>>, %arg3: memref<32x8xbf16, #tpu.memory_space<vmem>>, %arg4: memref<32x8xbf16, #tpu.memory_space<vmem>>, %arg5: memref<1x32xf32, #tpu.memory_space<vmem>>, %arg6: memref<1x8xf32, #tpu.memory_space<vmem>>, %arg7: memref<1x8xf32, #tpu.memory_space<vmem>>, %arg8: memref<16x32xf32, #tpu.memory_space<vmem>>, %arg9: memref<16x8xf32, #tpu.memory_space<vmem>>, %arg10: memref<16x8xf32, #tpu.memory_space<vmem>>) attributes {dimension_semantics = [#tpu.dimension_semantics<parallel>], iteration_bounds = array<i64: 1>, scalar_prefetch = 0 : i64, scratch_operands = 0 : i64, tpu.core_type = #tpu.core_type<tc>, window_params = [{transform_indices = @transform_0, window_bounds = array<i64: 16, 32>}, {pipeline_mode = #tpu.pipeline_mode<synchronous>, transform_indices = @transform_1, window_bounds = array<i64: 32, 32>}, {pipeline_mode = #tpu.pipeline_mode<synchronous>, transform_indices = @transform_2, window_bounds = array<i64: 32, 8>}, {pipeline_mode = #tpu.pipeline_mode<synchronous>, transform_indices = @transform_3, window_bounds = array<i64: 32, 8>}, {pipeline_mode = #tpu.pipeline_mode<synchronous>, transform_indices = @transform_4, window_bounds = array<i64: 1, 32>}, {pipeline_mode = #tpu.pipeline_mode<synchronous>, transform_indices = @transform_5, window_bounds = array<i64: 1, 8>}, {pipeline_mode = #tpu.pipeline_mode<synchronous>, transform_indices = @transform_6, window_bounds = array<i64: 1, 8>}, {transform_indices = @transform_7, window_bounds = array<i64: 16, 32>}, {transform_indices = @transform_8, window_bounds = array<i64: 16, 8>}, {transform_indices = @transform_9, window_bounds = array<i64: 16, 8>}]} {
    %c0 = arith.constant 0 : index
    %c0_0 = arith.constant 0 : index
    %0 = vector.load %arg1[%c0, %c0_0] : memref<16x32xf32, #tpu.memory_space<vmem>>, vector<16x32xf32>
    %1 = arith.truncf %0 : vector<16x32xf32> to vector<16x32xbf16>
    %c0_1 = arith.constant 0 : index
    %c0_2 = arith.constant 0 : index
    %2 = vector.load %arg2[%c0_1, %c0_2] : memref<32x32xbf16, #tpu.memory_space<vmem>>, vector<32x32xbf16>
    %cst = arith.constant dense<0.000000e+00> : vector<16x32xf32>
    %3 = tpu.matmul %1, %2, %cst {dimension_numbers = #tpu.dot_dimension_numbers<[1], [0], [0], [1], [0, 0, 1, 1], [], []>} : vector<16x32xbf16>, vector<32x32xbf16>, vector<16x32xf32> -> vector<16x32xf32>
    %c0_3 = arith.constant 0 : index
    %c0_4 = arith.constant 0 : index
    %4 = vector.load %arg5[%c0_3, %c0_4] : memref<1x32xf32, #tpu.memory_space<vmem>>, vector<1x32xf32>
    %5 = vector.broadcast %4 : vector<1x32xf32> to vector<16x32xf32>
    %6 = arith.addf %3, %5 : vector<16x32xf32>
    %c0_5 = arith.constant 0 : index
    %c0_6 = arith.constant 0 : index
    %7 = vector.load %arg8[%c0_5, %c0_6] : memref<16x32xf32, #tpu.memory_space<vmem>>, vector<16x32xf32>
    tpu.vector_store %arg8[%c0_5, %c0_6], %6 {strides = array<i32>} : memref<16x32xf32, #tpu.memory_space<vmem>>, vector<16x32xf32>,
    %c0_7 = arith.constant 0 : index
    %c0_8 = arith.constant 0 : index
    %8 = vector.load %arg3[%c0_7, %c0_8] : memref<32x8xbf16, #tpu.memory_space<vmem>>, vector<32x8xbf16>
    %cst_9 = arith.constant dense<0.000000e+00> : vector<16x8xf32>
    %9 = tpu.matmul %1, %8, %cst_9 {dimension_numbers = #tpu.dot_dimension_numbers<[1], [0], [0], [1], [0, 0, 1, 1], [], []>} : vector<16x32xbf16>, vector<32x8xbf16>, vector<16x8xf32> -> vector<16x8xf32>
    %c0_10 = arith.constant 0 : index
    %c0_11 = arith.constant 0 : index
    %10 = vector.load %arg6[%c0_10, %c0_11] : memref<1x8xf32, #tpu.memory_space<vmem>>, vector<1x8xf32>
    %11 = vector.broadcast %10 : vector<1x8xf32> to vector<16x8xf32>
    %12 = arith.addf %9, %11 : vector<16x8xf32>
    %c0_12 = arith.constant 0 : index
    %c0_13 = arith.constant 0 : index
    %13 = vector.load %arg9[%c0_12, %c0_13] : memref<16x8xf32, #tpu.memory_space<vmem>>, vector<16x8xf32>
    tpu.vector_store %arg9[%c0_12, %c0_13], %12 {strides = array<i32>} : memref<16x8xf32, #tpu.memory_space<vmem>>, vector<16x8xf32>,
    %c0_14 = arith.constant 0 : index
    %c0_15 = arith.constant 0 : index
    %14 = vector.load %arg4[%c0_14, %c0_15] : memref<32x8xbf16, #tpu.memory_space<vmem>>, vector<32x8xbf16>
    %cst_16 = arith.constant dense<0.000000e+00> : vector<16x8xf32>
    %15 = tpu.matmul %1, %14, %cst_16 {dimension_numbers = #tpu.dot_dimension_numbers<[1], [0], [0], [1], [0, 0, 1, 1], [], []>} : vector<16x32xbf16>, vector<32x8xbf16>, vector<16x8xf32> -> vector<16x8xf32>
    %c0_17 = arith.constant 0 : index
    %c0_18 = arith.constant 0 : index
    %16 = vector.load %arg7[%c0_17, %c0_18] : memref<1x8xf32, #tpu.memory_space<vmem>>, vector<1x8xf32>
    %17 = vector.broadcast %16 : vector<1x8xf32> to vector<16x8xf32>
    %18 = arith.addf %15, %17 : vector<16x8xf32>
    %c0_19 = arith.constant 0 : index
    %c0_20 = arith.constant 0 : index
    %19 = vector.load %arg10[%c0_19, %c0_20] : memref<16x8xf32, #tpu.memory_space<vmem>>, vector<16x8xf32>
    tpu.vector_store %arg10[%c0_19, %c0_20], %18 {strides = array<i32>} : memref<16x8xf32, #tpu.memory_space<vmem>>, vector<16x8xf32>,
    return
  }
  func.func @transform_0(%arg0: i32) -> (i32, i32) {
    %c0_i32 = arith.constant 0 : i32
    %c0_i32_0 = arith.constant 0 : i32
    return %arg0, %c0_i32 : i32, i32
  }
  func.func @transform_1(%arg0: i32) -> (i32, i32) {
    %c0_i32 = arith.constant 0 : i32
    %c0_i32_0 = arith.constant 0 : i32
    %c0_i32_1 = arith.constant 0 : i32
    return %c0_i32, %c0_i32_0 : i32, i32
  }
  func.func @transform_2(%arg0: i32) -> (i32, i32) {
    %c0_i32 = arith.constant 0 : i32
    %c0_i32_0 = arith.constant 0 : i32
    %c0_i32_1 = arith.constant 0 : i32
    return %c0_i32, %c0_i32_0 : i32, i32
  }
  func.func @transform_3(%arg0: i32) -> (i32, i32) {
    %c0_i32 = arith.constant 0 : i32
    %c0_i32_0 = arith.constant 0 : i32
    %c0_i32_1 = arith.constant 0 : i32
    return %c0_i32, %c0_i32_0 : i32, i32
  }
  func.func @transform_4(%arg0: i32) -> (i32, i32) {
    %c0_i32 = arith.constant 0 : i32
    %c0_i32_0 = arith.constant 0 : i32
    %c0_i32_1 = arith.constant 0 : i32
    return %c0_i32, %c0_i32_0 : i32, i32
  }
  func.func @transform_5(%arg0: i32) -> (i32, i32) {
    %c0_i32 = arith.constant 0 : i32
    %c0_i32_0 = arith.constant 0 : i32
    %c0_i32_1 = arith.constant 0 : i32
    return %c0_i32, %c0_i32_0 : i32, i32
  }
  func.func @transform_6(%arg0: i32) -> (i32, i32) {
    %c0_i32 = arith.constant 0 : i32
    %c0_i32_0 = arith.constant 0 : i32
    %c0_i32_1 = arith.constant 0 : i32
    return %c0_i32, %c0_i32_0 : i32, i32
  }
  func.func @transform_7(%arg0: i32) -> (i32, i32) {
    %c0_i32 = arith.constant 0 : i32
    %c0_i32_0 = arith.constant 0 : i32
    return %arg0, %c0_i32 : i32, i32
  }
  func.func @transform_8(%arg0: i32) -> (i32, i32) {
    %c0_i32 = arith.constant 0 : i32
    %c0_i32_0 = arith.constant 0 : i32
    return %arg0, %c0_i32 : i32, i32
  }
  func.func @transform_9(%arg0: i32) -> (i32, i32) {
    %c0_i32 = arith.constant 0 : i32
    %c0_i32_0 = arith.constant 0 : i32
    return %arg0, %c0_i32 : i32, i32
  }
}

</mosaic_0001>

<bundles_post_ra>
// kernel: tpu_custom_call.1
= control target key start
LH: loop header
LB: loop body
LE: loop exit
PB: predicated region body
PF: predicated region fallthrough
CT: control target
= control target key end

     0   :  { %v339_v1 = vmov 0.0   ;;  %vm340_vm0 = vmmov 0   ;;  %vm57_vm1 = vcmask 261120   ;;  %s454_s0 = inlined_call_operand.vmem [shape: f32[16,32], index: 0, kind: input, shape index: {}]   ;;  %s455_s1 = inlined_call_operand.vmem [shape: bf16[32,32], index: 1, kind: input, shape index: {}]   ;;  %s456_s2 = inlined_call_operand.vmem [shape: bf16[32,8], index: 2, kind: input, shape index: {}]   ;;  %s457_s3 = inlined_call_operand.vmem [shape: bf16[32,8], index: 3, kind: input, shape index: {}]   ;;  %s458_s4 = inlined_call_operand.vmem [shape: f32[1,32], index: 4, kind: input, shape index: {}]   ;;  %s459_s5 = inlined_call_operand.vmem [shape: f32[1,8], index: 5, kind: input, shape index: {}]   ;;  %s460_s6 = inlined_call_operand.vmem [shape: f32[1,8], index: 6, kind: input, shape index: {}]   ;;  %s461_s7 = inlined_call_operand.hbm [shape: f32[16,32], index: 7, kind: output, shape index: {0}]   ;;  %s462_s8 = inlined_call_operand.vmem [shape: f32[16,8], index: 8, kind: output, shape index: {1}]   ;;  %s463_s9 = inlined_call_operand.vmem [shape: f32[16,8], index: 9, kind: output, shape index: {2}]  }
   0x1   :  { %v311_v0 = vld [vmem:[%s455_s1 + $0x8] sm:$0xff]   ;;  %282 = vmatprep.subr.bf16.mxu0 %v339_v1  ;;  %290 = vmatprep.subr.bf16.mxu1 %v339_v1  ;;  %v313_v3 = vld [vmem:[%s455_s1] sm:$0xff]  }
   0x2   :  { %v312_v2 = vld [vmem:[%s456_s2 + $0x8] sm:$0xff]   ;;  %283 = vmatpush3.bf16.msra.mxu0 %v311_v0  ;;  %286 = vmatprep.mubr.msk.bf16.mxu0 %vm340_vm0, %v339_v1  ;;  %v31_v4 = vld [vmem:[%s454_s0] sm:$0xff] }
   0x3   :  { %284 = vmatprep.subr.bf16.mxu0 %v339_v1  ;;  %291 = vmatpush3.bf16.msra.mxu1 %v312_v2  ;;  %v32_v5 = vld [vmem:[%s454_s0 + $0x8] sm:$0xff]  ;;  %v314_v6 = vld [vmem:[%s456_s2] sm:$0xff]  }
   0x4   :  { %292 = vmatprep.subr.bf16.mxu1 %v339_v1  ;;  %294 = vmatprep.mubr.msk.bf16.mxu1 %vm340_vm0, %v339_v1  ;;  %v33_v7 = vpack.c.bf16 %v32_v5, %v31_v4  ;;  %v315_v8 = vld [vmem:[%s457_s3 + $0x8] sm:$0xff]  }
   0x6   :  { %285 = vmatpush3.bf16.msra.mxu0 %v313_v3 }
   0x7   :  { %293 = vmatpush3.bf16.msra.mxu1 %v314_v6  ;;  %298 = vmatprep.subr.bf16.mxu0 %v339_v1 }
   0x8   :  { %15 = vsyncpa [#allocation3], 0  ;;  %v316_v9 = vld [vmem:[%s457_s3] sm:$0xff]   ;;  %vm168_vm2 = vcmask 64512   ;;  %s341_s26 = smov [#allocation2]  }
   0x9   :  { %287 = vmatmul.mubr.msk.bf16.vlgmr.msra.gmra.mxu0 %vm57_vm1, %v33_v7  ;;  %v261_v10 = vld [vmem:[%s458_s4] ss:$0 sm:$0xff]  ;;  %s242_s3 = sshll.u32 %s341_s26, 4  ;;  %s243_s3 = int_to_ptr.vmem [resolvable:$true] %s242_s3 }
   0xa   :  { %299 = vmatpush3.bf16.msra.mxu0 %v315_v8  ;;  %295 = vmatmul.mubr.msk.bf16.vlgmr.msra.gmra.mxu1 %vm57_vm1, %v33_v7  ;;  %v265_v11 = vld [vmem:[%s459_s5] ss:$0 sm:$0xff]  ;;  %s317_s10 = scalar_lea.vmem %s243_s3, 256  ;;  %p322_p1 = scmp.lt.s32.totalorder %s243_s3, %s243_s3 }
   0xb   :  { %300 = vmatprep.subr.bf16.mxu0 %v339_v1  ;;  %302 = vmatprep.mubr.msk.bf16.mxu0 %vm340_vm0, %v339_v1  ;;  %v269_v23 = vld [vmem:[%s460_s6] ss:$0 sm:$0xff]  ;;  %p318_p0 = scmp.ne.s32.totalorder %s243_s3, %s317_s10  ;;  %p323_p2 = scmp.lt.s32.totalorder %s317_s10, %s317_s10 }
   0xd   :  { %p324_p3 = por %p323_p2, %p322_p1 }
   0xe   :  { %301 = vmatpush3.bf16.msra.mxu0 %v316_v9 }
   0xf   :  { %p325_p4 = pnand %p324_p3, %p318_p0 }
  0x11   :  { %303 = vmatmul.mubr.msk.bf16.vlgmr.msra.gmra.mxu0 %vm57_vm1, %v33_v7 }
  0xc9   :  { %v95_v12 = vpop.f32.mrf.mxu0 }
  0xca   :  { %v96_v13 = vadd.f32 %v261_v10, %v95_v12  ;;  %v161_v14 = vpop.f32.mrf.mxu1 }
  0xcb   :  { %v288_v15 = vpop.f32.mrf.mxu0  ;;  %v162_v16 = vadd.f32 %v265_v11, %v161_v14 }
  0xcc   :  { %102 = vst.msk [vmem:[#allocation2] sm:$0xff] %vm57_vm1, %v96_v13  ;;  %v296_v17 = vpop.f32.mrf.mxu1 }
  0xcd   :  { %169 = vst.msk [vmem:[%s462_s8] sm:$0xff] %vm168_vm2, %v162_v16  ;;  %v98_v18 = vpop.f32.mrf.mxu0 }
  0xce   :  { %v99_v19 = vadd.f32 %v261_v10, %v98_v18  ;;  %v164_v20 = vpop.f32.mrf.mxu1 }
  0xcf   :  { %v289_v21 = vpop.f32.mrf.mxu0  ;;  %v165_v22 = vadd.f32 %v265_v11, %v164_v20 }
  0xd0   :  { %103 = vst.msk [vmem:[#allocation2 + $0x8] sm:$0xff] %vm57_vm1, %v99_v19  ;;  %v297_v24 = vpop.f32.mrf.mxu1 }
  0xd1   :  { %170 = vst.msk [vmem:[%s462_s8 + $0x8] sm:$0xff] %vm168_vm2, %v165_v22  ;;  %v228_v25 = vpop.f32.mrf.mxu0 }
  0xd2   :  { %328 = shalt.err (!%p325_p4)
}
  0xd3   :  { %s342_s11 = smov 128   ;;  %s343_s12 = smov 8   ;;  %v229_v26 = vadd.f32 %v269_v23, %v228_v25  ;;  %v304_v27 = vpop.f32.mrf.mxu0 }
  0xd4   :  { %248 = dma.vmem_to_hbm [thread:$0]  %s243_s3, 256, %s461_s7, [#allocation3], %s342_s11, %s342_s11, %s343_s12  }
  0xd5   :  { %235 = vst.msk [vmem:[%s463_s9] sm:$0xff] %vm168_vm2, %v229_v26  ;;  %v231_v28 = vpop.f32.mrf.mxu0 }
  0xd6   :  { %v232_v29 = vadd.f32 %v269_v23, %v231_v28 }
  0xd7   :  { %v305_v30 = vpop.f32.mrf.mxu0 }
  0xd8   :  { %236 = vst.msk [vmem:[%s463_s9 + $0x8] sm:$0xff] %vm168_vm2, %v232_v29 }
  0xd9   :  { %337 = dma.done.wait [#allocation3], 256  }
  0xda   :  { %338 = vsyncadd [#allocation3], 4294967040 }
  0xdb   :  { %260 = vsyncpa [#allocation3], 1 }

</bundles_post_ra>
